<compile_context>
chip_gen: v7x
topology: tpu7x:2x2x1
jax: 0.10.0
libtpu: 0.0.40
codegen_flags: <defaults>
</compile_context>

<pallas_src>
import jax
import jax.numpy as jnp
from jax.experimental import pallas as pl
from jax.experimental.pallas import tpu as pltpu


_TILE_BYTES = 4 << 20          # ~4 MiB x-tile target (review: 2-4 MiB)
_VMEM_LIMIT = 48 * 1024 * 1024  # headroom for 2 bufs x (x + pe + out) tiles


def _build_pe_table(d_model: int, max_len: int = 5000, dtype=jnp.float32):
    """Sinusoidal positional-encoding table (max_len, d_model).

    Matches the PyTorch module for even d_model:
        pe[:, 0::2] = sin(position * div_term)
        pe[:, 1::2] = cos(position * div_term)
    Odd d_model (which breaks the PyTorch module) is handled by building
    2*ceil(D/2) interleaved columns and truncating.
    """
    half = (d_model + 1) // 2
    position = jnp.arange(max_len, dtype=jnp.float32)[:, None]              # (L, 1)
    div_term = jnp.exp(
        jnp.arange(0, 2 * half, 2, dtype=jnp.float32)
        * (-jnp.log(jnp.float32(10000.0)) / d_model)
    )                                                                       # (half,)
    angles = position * div_term                                            # (L, half)
    pe = jnp.stack([jnp.sin(angles), jnp.cos(angles)], axis=-1)             # (L, half, 2)
    return pe.reshape(max_len, 2 * half)[:, :d_model].astype(dtype)


def _add_pe_kernel(x_ref, pe_ref, o_ref):
    # x_ref / o_ref: (TB, TR, W) tile; pe_ref: (TR, W) tile shared across the
    # batch-tile (broadcast over the leading dim is a cheap leading-dim bcast).
    o_ref[...] = x_ref[...] + pe_ref[...]


@jax.jit
def positional_encoding_forward(x, pe_full):
    """x: (B, N, D). pe_full: (max_len, D) precomputed sinusoidal table."""
    B, N, D = x.shape
    L, D2 = pe_full.shape
    if D != D2:
        raise ValueError(f"d_model mismatch: x has D={D}, pe table has D={D2}")
    if N > L:
        raise ValueError(f"sequence length {N} exceeds max_len {L}")
    if pe_full.dtype != x.dtype:
        pe_full = pe_full.astype(x.dtype)
    itemsize = jnp.dtype(x.dtype).itemsize

    # --- choose a lane-dense 2-D row layout (rows R of width W) -------------
    padded = False
    if D % 128 == 0:
        # Already lane-dense: keep (N, D) rows.
        W, R = D, N
        x3, pe2 = x, pe_full
    elif (N * D) % 128 == 0:
        # Flatten (seq, d_model) and re-chunk into 128-wide rows (free reshape).
        W = 128
        R = (N * D) // W
        x3 = x.reshape(B, R, W)
        pe2 = pe_full[:N].reshape(R, W)
    else:
        # Ragged D: pad last dim up to the next multiple of 128 so every
        # vreg / VMEM tile / store is fully lane-dense (no masked vst.msk).
        W = ((D + 127) // 128) * 128
        R = N
        padded = True
        x3 = jnp.pad(x, ((0, 0), (0, 0), (0, W - D)))
        pe2 = jnp.pad(pe_full, ((0, 0), (0, W - D)))

    # --- pick tile sizes: TR rows per tile, TB batch elements per tile ------
    slab_bytes = R * W * itemsize  # one batch element's slab
    if slab_bytes >= _TILE_BYTES or B == 1:
        # Tile the row axis; one batch element per block.
        TB = 1
        if R <= 8:
            TR = R
        else:
            max_rows = max(8, _TILE_BYTES // (W * itemsize))
            TR = min(R, max_rows)
            TR = max(8, (TR // 8) * 8)
    else:
        # Small per-batch slab: take all rows, tile the batch axis instead so
        # each grid step moves a meaningful number of bytes.
        TR = R
        TB = max(1, min(B, _TILE_BYTES // max(1, slab_bytes)))

    # (8, 128) constraint: if TR is not a multiple of 8 it must equal the full
    # first dim of the PE operand -> slice the table to exactly R rows.
    if TR % 8 != 0:
        pe2 = pe2[:R]

    num_r = pl.cdiv(R, TR)
    num_b = pl.cdiv(B, TB)

    out = pl.pallas_call(
        _add_pe_kernel,
        out_shape=jax.ShapeDtypeStruct((B, R, W), x.dtype),
        # Row-tile axis OUTER, batch axis INNER: PE block index is constant
        # across the inner batch loop -> Pallas skips the PE re-DMA.
        grid=(num_r, num_b),
        in_specs=[
            pl.BlockSpec((TB, TR, W), lambda r, b: (b, r, 0)),  # x tile
            pl.BlockSpec((TR, W), lambda r, b: (r, 0)),         # shared PE tile
        ],
        out_specs=pl.BlockSpec((TB, TR, W), lambda r, b: (b, r, 0)),
        compiler_params=pltpu.CompilerParams(
            dimension_semantics=("parallel", "parallel"),
            vmem_limit_bytes=_VMEM_LIMIT,
        ),
        cost_estimate=pl.CostEstimate(
            flops=B * N * D,
            transcendentals=0,
            bytes_accessed=int((2 * B + 1) * N * D * itemsize),
        ),
    )(x3, pe2)

    if padded:
        return out[:, :, :D]
    return out.reshape(B, N, D)


if __name__ == "__main__":
    key = jax.random.PRNGKey(0)
    max_len = 5000

    # Small configs exercising each layout/tiling path:
    #   (2, 8, 32):  D < 128, N*D % 128 == 0 -> flat lane-dense path, batch-tiled
    #   (2, 16, 128): D % 128 == 0           -> native lane-dense path, batch-tiled
    #   (1, 8, 24):  ragged D                -> padded lane-dense path (W=128)
    #   (3, 40, 64): flat path with R=20 (TR==R, not a multiple of 8)
    configs = [(2, 8, 32), (2, 16, 128), (1, 8, 24), (3, 40, 64)]

    for i, (B, N, D) in enumerate(configs):
        k = jax.random.fold_in(key, i)
        x = jax.random.normal(k, (B, N, D), dtype=jnp.float32)
        pe_full = _build_pe_table(D, max_len=max_len, dtype=jnp.float32)

        out = jax.block_until_ready(positional_encoding_forward(x, pe_full))

        ref = x + pe_full[None, :N, :]
        assert out.shape == (B, N, D)
        assert jnp.allclose(out, ref, atol=1e-6, rtol=1e-6), f"mismatch at {(B, N, D)}"

    print("KERNEL_OK")
</pallas_src>

<mosaic_0001>
module attributes {stable_mosaic.version = 11 : i64} {
  func.func @_add_pe_kernel(%arg0: i32, %arg1: i32, %arg2: memref<2x2x128xf32, #tpu.memory_space<vmem>>, %arg3: memref<2x128xf32, #tpu.memory_space<vmem>>, %arg4: memref<2x2x128xf32, #tpu.memory_space<vmem>>) attributes {dimension_semantics = [#tpu.dimension_semantics<parallel>, #tpu.dimension_semantics<parallel>], iteration_bounds = array<i64: 1, 1>, scalar_prefetch = 0 : i64, scratch_operands = 0 : i64, tpu.core_type = #tpu.core_type<tc>, window_params = [{transform_indices = @transform_0, window_bounds = array<i64: 2, 2, 128>}, {transform_indices = @transform_1, window_bounds = array<i64: 2, 128>}, {transform_indices = @transform_2, window_bounds = array<i64: 2, 2, 128>}]} {
    %c0 = arith.constant 0 : index
    %c0_0 = arith.constant 0 : index
    %c0_1 = arith.constant 0 : index
    %0 = vector.load %arg2[%c0, %c0_0, %c0_1] : memref<2x2x128xf32, #tpu.memory_space<vmem>>, vector<2x2x128xf32>
    %c0_2 = arith.constant 0 : index
    %c0_3 = arith.constant 0 : index
    %1 = vector.load %arg3[%c0_2, %c0_3] : memref<2x128xf32, #tpu.memory_space<vmem>>, vector<2x128xf32>
    %2 = vector.shape_cast %1 : vector<2x128xf32> to vector<1x2x128xf32>
    %3 = vector.broadcast %2 : vector<1x2x128xf32> to vector<2x2x128xf32>
    %4 = arith.addf %0, %3 : vector<2x2x128xf32>
    %c0_4 = arith.constant 0 : index
    %c0_5 = arith.constant 0 : index
    %c0_6 = arith.constant 0 : index
    %5 = vector.load %arg4[%c0_4, %c0_5, %c0_6] : memref<2x2x128xf32, #tpu.memory_space<vmem>>, vector<2x2x128xf32>
    tpu.vector_store %arg4[%c0_4, %c0_5, %c0_6], %4 {strides = array<i32>} : memref<2x2x128xf32, #tpu.memory_space<vmem>>, vector<2x2x128xf32>,
    return
  }
  func.func @transform_0(%arg0: i32, %arg1: i32) -> (i32, i32, i32) {
    %c0_i32 = arith.constant 0 : i32
    %c0_i32_0 = arith.constant 0 : i32
    return %arg1, %arg0, %c0_i32 : i32, i32, i32
  }
  func.func @transform_1(%arg0: i32, %arg1: i32) -> (i32, i32) {
    %c0_i32 = arith.constant 0 : i32
    %c0_i32_0 = arith.constant 0 : i32
    return %arg0, %c0_i32 : i32, i32
  }
  func.func @transform_2(%arg0: i32, %arg1: i32) -> (i32, i32, i32) {
    %c0_i32 = arith.constant 0 : i32
    %c0_i32_0 = arith.constant 0 : i32
    return %arg1, %arg0, %c0_i32 : i32, i32, i32
  }
}

</mosaic_0001>

<bundles_post_ra>
// kernel: positional_encoding_forward.1
= control target key start
LH: loop header
LB: loop body
LE: loop exit
PB: predicated region body
PF: predicated region fallthrough
CT: control target
= control target key end

     0   :  { %s52_s0 = inlined_call_operand.vmem [shape: f32[2,2,128], index: 0, kind: input, shape index: {}]   ;;  %s53_s1 = inlined_call_operand.vmem [shape: f32[2,128], index: 1, kind: input, shape index: {}]   ;;  %s54_s2 = inlined_call_operand.vmem [shape: f32[2,2,128], index: 2, kind: output, shape index: {}]  }
   0x1   :  { %v11_v0 = vld [vmem:[%s52_s0] sm:$0x3]  ;;  %v12_v2 = vld [vmem:[%s52_s0 + $0x2] sm:$0x3] }
   0x2   :  { %v13_v1 = vld [vmem:[%s53_s1] sm:$0x3] }
   0x3   :  { %v14_v3 = vadd.f32 %v13_v1, %v11_v0  ;;  %v15_v4 = vadd.f32 %v13_v1, %v12_v2 }
   0x5   :  { %16 = vst [vmem:[%s54_s2] sm:$0x3] %v14_v3  ;;  %17 = vst [vmem:[%s54_s2 + $0x2] sm:$0x3] %v15_v4 }

</bundles_post_ra>
